<compile_context>
chip_gen: v7x
topology: tpu7x:2x2x1
jax: 0.10.0
libtpu: 0.0.40
codegen_flags: <defaults>
</compile_context>

<pallas_src>
import jax
import jax.numpy as jnp
import numpy as np
from jax import lax
from jax.experimental import pallas as pl
from jax.experimental.pallas import tpu as pltpu


def _acs_kernel(x_ref, top_ref, bot_ref, w_ref, b_ref, f_ref, o_ref, xpad_ref):
    # Per grid step (n, t):
    #   x_ref   : (1, TH, W, C)  this row-tile of x (operand dtype, f32 or bf16)
    #   top_ref : (1, 1,  W, C)  row just above the tile (index clamped at image top)
    #   bot_ref : (1, 1,  W, C)  row just below the tile (index clamped at image bottom)
    #   w_ref   : (3, 3, C, C)   re-param 3x3 weights (1x1+BN already folded into [1,1]), f32
    #   b_ref   : (1, C)         folded BN bias, f32
    #   f_ref   : (1, 1, C)      precomputed SSE gate for this batch element, f32
    #   o_ref   : (1, TH, W, C)  output tile
    #   xpad_ref: (TH+2, W+2, C) f32 VMEM staging scratch (zero-padded tile)
    TH, W, C = x_ref.shape[1], x_ref.shape[2], x_ref.shape[3]
    t = pl.program_id(1)
    num_t = pl.num_programs(1)
    f32 = jnp.float32

    # ---- stage the zero-padded tile in VMEM (replaces the old full-image jnp.pad in HBM).
    # Every byte of the scratch is rewritten each step -> safe under "parallel" semantics.
    xpad_ref[:, 0:1, :] = jnp.zeros((TH + 2, 1, C), f32)
    xpad_ref[:, W + 1:W + 2, :] = jnp.zeros((TH + 2, 1, C), f32)
    xpad_ref[0:1, 1:W + 1, :] = jnp.zeros((1, W, C), f32)
    xpad_ref[TH + 1:TH + 2, 1:W + 1, :] = jnp.zeros((1, W, C), f32)

    x_tile = x_ref[0].astype(f32)                       # (TH, W, C), reused by the gate term
    xpad_ref[1:TH + 1, 1:W + 1, :] = x_tile

    @pl.when(t > 0)
    def _():                                            # halo row above (stays zero at image top)
        xpad_ref[0:1, 1:W + 1, :] = top_ref[0].astype(f32)

    @pl.when(t < num_t - 1)
    def _():                                            # halo row below (stays zero at image bottom)
        xpad_ref[TH + 1:TH + 2, 1:W + 1, :] = bot_ref[0].astype(f32)

    # ---- re-parameterized 3x3 conv: 9 shifted MXU matmuls with f32 accumulation.
    # The 1x1+BN branch is pre-folded into w_ref[1,1]; no separate branch matmul / add.
    # Patches are ref-sliced from the scratch so only one (TH*W, C) patch is live at a time.
    acc = jnp.dot(xpad_ref[0:TH, 0:W, :].reshape(TH * W, C), w_ref[0, 0],
                  preferred_element_type=f32)
    for dy in range(3):
        for dx in range(3):
            if dy == 0 and dx == 0:
                continue
            patch = xpad_ref[dy:dy + TH, dx:dx + W, :].reshape(TH * W, C)
            acc = acc + jnp.dot(patch, w_ref[dy, dx], preferred_element_type=f32)
    # TODO(synk): pack the 3 dx-taps of each row slab into one K=3C matmul (needs a
    # minor-dim concat) to improve MXU fill for tiny C; kept as 9 K=C matmuls for
    # lowering robustness.

    # ---- folded bias + precomputed SSE gate:  out = conv + b + factor * x
    out = acc + b_ref[...] + f_ref[0] * x_tile.reshape(TH * W, C)

    # Dropout2d(p=0.2) is identity in eval mode; activation is Identity.
    # TODO(synk): train-mode channel dropout (stochastic) intentionally not modeled.
    # TODO(synk): for C < 128 a (TH, W*C) lane-dense output repack would avoid masked
    # vst; production channel counts (C >= 128) are already lane-dense, so skipped here.
    o_ref[0] = out.reshape(TH, W, C).astype(o_ref.dtype)


def acs_forward(x_nchw, w3_torch, w1_torch, bn_gamma, bn_beta, bn_mean, bn_var,
                wsse_torch, bsse, *, eps=1e-5, row_tile=None,
                operand_dtype=jnp.float32):
    """ACS eval-mode forward. x_nchw: (N, C, H, W). operand_dtype controls the HBM
    storage dtype of the activation fed to the kernel (bf16 halves HBM traffic on
    v6e/v7x); staging, accumulation and the elementwise tail stay in f32."""
    N, C, H, W = x_nchw.shape
    out_dtype = x_nchw.dtype

    # ---- glue (plain JAX): layout, BN fold, 1x1 -> 3x3 re-param fold, SSE gate ----
    x = jnp.transpose(x_nchw, (0, 2, 3, 1))                           # NHWC

    s = bn_gamma / jnp.sqrt(bn_var + eps)                             # inference BN scale
    w1_eff = jnp.transpose(w1_torch[:, :, 0, 0], (1, 0)) * s[None, :]  # (Cin, Cout)
    b_eff = (bn_beta - bn_mean * s)[None, :].astype(jnp.float32)       # (1, C)

    w3 = jnp.transpose(w3_torch, (2, 3, 1, 0))                         # (kh, kw, Cin, Cout)
    w3 = w3.at[1, 1].add(w1_eff).astype(jnp.float32)                   # fold 1x1+BN into center tap

    # SSE gate uses the *global* spatial mean -> must be computed outside the row-tiled
    # kernel (also removes an XLU reduction + a wasted MXU issue from the kernel).
    pooled = jnp.mean(x, axis=(1, 2))                                  # (N, C)
    wsse = jnp.transpose(wsse_torch[:, :, 0, 0], (1, 0))               # (Cin, Cout)
    factor = jax.nn.sigmoid(pooled @ wsse + bsse[None, :])             # (N, C)
    factor = factor[:, None, :].astype(jnp.float32)                    # (N, 1, C)

    x_op = x.astype(operand_dtype)      # only the big activation tensor changes dtype

    # ---- row tiling: keeps per-step VMEM small (v7x: 64 MiB) and gives a second
    # parallel grid axis so both v7x TensorCores stay busy even for small N.
    if row_tile is None or H % row_tile != 0:
        row_tile = max(d for d in range(1, H + 1) if H % d == 0 and d <= 32)
    TH = row_tile
    T = H // TH

    flops = 2 * N * H * W * 9 * C * C
    bytes_accessed = (int(x_op.size) * x_op.dtype.itemsize      # activation in
                      + N * H * W * C * 4                        # output
                      + 9 * C * C * 4 + C * 4 + N * C * 4)       # weights / bias / gate

    out_nhwc = pl.pallas_call(
        _acs_kernel,
        out_shape=jax.ShapeDtypeStruct((N, H, W, C), out_dtype),
        grid_spec=pltpu.PrefetchScalarGridSpec(
            num_scalar_prefetch=0,
            grid=(N, T),
            in_specs=[
                # this row-tile
                pl.BlockSpec((1, TH, W, C), lambda n, t: (n, t, 0, 0)),
                # 1-row halos (element-row indices; clamped at the image border, the
                # kernel zeroes them there via pl.when)
                pl.BlockSpec((1, 1, W, C),
                             lambda n, t: (n, jnp.maximum(t * TH - 1, 0), 0, 0)),
                pl.BlockSpec((1, 1, W, C),
                             lambda n, t: (n, jnp.minimum(t * TH + TH, H - 1), 0, 0)),
                # small, grid-invariant operands
                pl.BlockSpec((3, 3, C, C), lambda n, t: (0, 0, 0, 0)),
                pl.BlockSpec((1, C), lambda n, t: (0, 0)),
                pl.BlockSpec((1, 1, C), lambda n, t: (n, 0, 0)),
            ],
            out_specs=pl.BlockSpec((1, TH, W, C), lambda n, t: (n, t, 0, 0)),
            scratch_shapes=[pltpu.VMEM((TH + 2, W + 2, C), jnp.float32)],
        ),
        compiler_params=pltpu.CompilerParams(
            dimension_semantics=("parallel", "parallel"),
            vmem_limit_bytes=32 * 1024 * 1024),
        cost_estimate=pl.CostEstimate(flops=flops, transcendentals=0,
                                      bytes_accessed=bytes_accessed),
    )(x_op, x_op, x_op, w3, b_eff, factor)

    return jnp.transpose(out_nhwc, (0, 3, 1, 2))                       # back to NCHW


def acs_reference(x, w3, w1, g, b, rm, rv, wsse, bsse, eps=1e-5):
    """Pure-JAX reference mirroring the PyTorch forward (eval mode, un-folded)."""
    dn = ("NCHW", "OIHW", "NCHW")
    acs_main = lax.conv_general_dilated(x, w3, (1, 1), ((1, 1), (1, 1)),
                                        dimension_numbers=dn)
    conv1 = lax.conv_general_dilated(x, w1, (1, 1), ((0, 0), (0, 0)),
                                     dimension_numbers=dn)
    s = (g / jnp.sqrt(rv + eps))[None, :, None, None]
    acs_3x3 = conv1 * s + (b - rm * g / jnp.sqrt(rv + eps))[None, :, None, None]
    out = acs_main + acs_3x3
    pooled = jnp.mean(x, axis=(2, 3))                                  # (N, C)
    logits = pooled @ wsse[:, :, 0, 0].T + bsse[None, :]
    factor = jax.nn.sigmoid(logits)[:, :, None, None]
    return out + factor * x


if __name__ == "__main__":
    key = jax.random.PRNGKey(0)
    ks = jax.random.split(key, 9)

    N, C, H, W = 2, 8, 16, 16   # small shapes; in_channels even as the module implies

    x = jax.random.normal(ks[0], (N, C, H, W), jnp.float32)

    # deterministic synthetic parameters (PyTorch weight layouts)
    w3 = jax.random.normal(ks[1], (C, C, 3, 3), jnp.float32) * 0.1   # acs_main
    w1 = jax.random.normal(ks[2], (C, C, 1, 1), jnp.float32) * 0.1   # acs_3x3.conv1
    bn_gamma = 1.0 + 0.1 * jax.random.normal(ks[3], (C,), jnp.float32)
    bn_beta = 0.1 * jax.random.normal(ks[4], (C,), jnp.float32)
    bn_mean = 0.1 * jax.random.normal(ks[5], (C,), jnp.float32)
    bn_var = jax.random.uniform(ks[6], (C,), jnp.float32, 0.5, 1.5)
    wsse = jax.random.normal(ks[7], (C, C, 1, 1), jnp.float32) * 0.1  # sse.conv
    bsse = 0.1 * jax.random.normal(ks[8], (C,), jnp.float32)

    ref = acs_reference(x, w3, w1, bn_gamma, bn_beta, bn_mean, bn_var, wsse, bsse)

    # f32 operands, row_tile=8 -> grid (2, 2): exercises the halo path; tight check.
    out = acs_forward(x, w3, w1, bn_gamma, bn_beta, bn_mean, bn_var, wsse, bsse,
                      row_tile=8)
    out = jax.block_until_ready(out)
    np.testing.assert_allclose(np.asarray(out), np.asarray(ref),
                               rtol=1e-4, atol=1e-4)

    # bf16 activation storage (f32 accumulation) -- halves HBM traffic on v6e/v7x.
    out_bf16 = acs_forward(x, w3, w1, bn_gamma, bn_beta, bn_mean, bn_var, wsse, bsse,
                           row_tile=8, operand_dtype=jnp.bfloat16)
    out_bf16 = jax.block_until_ready(out_bf16)
    np.testing.assert_allclose(np.asarray(out_bf16), np.asarray(ref),
                               rtol=1e-1, atol=1e-1)

    print("KERNEL_OK")
</pallas_src>

<mosaic_0001>
module attributes {stable_mosaic.version = 11 : i64} {
  func.func @_acs_kernel(%arg0: i32, %arg1: i32, %arg2: memref<1x8x16x8xf32, #tpu.memory_space<vmem>>, %arg3: memref<1x1x16x8xf32, #tpu.memory_space<vmem>>, %arg4: memref<1x1x16x8xf32, #tpu.memory_space<vmem>>, %arg5: memref<3x3x8x8xf32, #tpu.memory_space<vmem>>, %arg6: memref<1x8xf32, #tpu.memory_space<vmem>>, %arg7: memref<1x1x8xf32, #tpu.memory_space<vmem>>, %arg8: memref<1x8x16x8xf32, #tpu.memory_space<vmem>>, %arg9: memref<10x18x8xf32, #tpu.memory_space<vmem>>) attributes {dimension_semantics = [#tpu.dimension_semantics<parallel>, #tpu.dimension_semantics<parallel>], iteration_bounds = array<i64: 2, 2>, scalar_prefetch = 0 : i64, scratch_operands = 1 : i64, tpu.core_type = #tpu.core_type<tc>, window_params = [{transform_indices = @transform_0, window_bounds = array<i64: 1, 8, 16, 8>}, {transform_indices = @transform_1, window_bounds = array<i64: 1, 1, 16, 8>}, {transform_indices = @transform_2, window_bounds = array<i64: 1, 1, 16, 8>}, {pipeline_mode = #tpu.pipeline_mode<synchronous>, transform_indices = @transform_3, window_bounds = array<i64: 3, 3, 8, 8>}, {pipeline_mode = #tpu.pipeline_mode<synchronous>, transform_indices = @transform_4, window_bounds = array<i64: 1, 8>}, {transform_indices = @transform_5, window_bounds = array<i64: 1, 1, 8>}, {transform_indices = @transform_6, window_bounds = array<i64: 1, 8, 16, 8>}]} {
    %cst = arith.constant 0.000000e+00 : f32
    %0 = vector.broadcast %cst : f32 to vector<10x1x8xf32>
    %c0 = arith.constant 0 : index
    %c0_0 = arith.constant 0 : index
    %c0_1 = arith.constant 0 : index
    %1 = vector.load %arg9[%c0, %c0_0, %c0_1] : memref<10x18x8xf32, #tpu.memory_space<vmem>>, vector<10x1x8xf32>
    tpu.vector_store %arg9[%c0, %c0_0, %c0_1], %0 {strides = array<i32>} : memref<10x18x8xf32, #tpu.memory_space<vmem>>, vector<10x1x8xf32>,
    %cst_2 = arith.constant 0.000000e+00 : f32
    %2 = vector.broadcast %cst_2 : f32 to vector<10x1x8xf32>
    %c0_3 = arith.constant 0 : index
    %c17 = arith.constant 17 : index
    %c0_4 = arith.constant 0 : index
    %3 = vector.load %arg9[%c0_3, %c17, %c0_4] : memref<10x18x8xf32, #tpu.memory_space<vmem>>, vector<10x1x8xf32>
    tpu.vector_store %arg9[%c0_3, %c17, %c0_4], %2 {strides = array<i32>} : memref<10x18x8xf32, #tpu.memory_space<vmem>>, vector<10x1x8xf32>,
    %cst_5 = arith.constant 0.000000e+00 : f32
    %4 = vector.broadcast %cst_5 : f32 to vector<1x16x8xf32>
    %c0_6 = arith.constant 0 : index
    %c1 = arith.constant 1 : index
    %c0_7 = arith.constant 0 : index
    %5 = vector.load %arg9[%c0_6, %c1, %c0_7] : memref<10x18x8xf32, #tpu.memory_space<vmem>>, vector<1x16x8xf32>
    tpu.vector_store %arg9[%c0_6, %c1, %c0_7], %4 {strides = array<i32>} : memref<10x18x8xf32, #tpu.memory_space<vmem>>, vector<1x16x8xf32>,
    %cst_8 = arith.constant 0.000000e+00 : f32
    %6 = vector.broadcast %cst_8 : f32 to vector<1x16x8xf32>
    %c9 = arith.constant 9 : index
    %c1_9 = arith.constant 1 : index
    %c0_10 = arith.constant 0 : index
    %7 = vector.load %arg9[%c9, %c1_9, %c0_10] : memref<10x18x8xf32, #tpu.memory_space<vmem>>, vector<1x16x8xf32>
    tpu.vector_store %arg9[%c9, %c1_9, %c0_10], %6 {strides = array<i32>} : memref<10x18x8xf32, #tpu.memory_space<vmem>>, vector<1x16x8xf32>,
    %c0_11 = arith.constant 0 : index
    %c0_12 = arith.constant 0 : index
    %c0_13 = arith.constant 0 : index
    %c0_14 = arith.constant 0 : index
    %8 = vector.load %arg2[%c0_11, %c0_12, %c0_13, %c0_14] : memref<1x8x16x8xf32, #tpu.memory_space<vmem>>, vector<1x8x16x8xf32>
    %9 = vector.shape_cast %8 : vector<1x8x16x8xf32> to vector<8x16x8xf32>
    %c1_15 = arith.constant 1 : index
    %c1_16 = arith.constant 1 : index
    %c0_17 = arith.constant 0 : index
    %10 = vector.load %arg9[%c1_15, %c1_16, %c0_17] : memref<10x18x8xf32, #tpu.memory_space<vmem>>, vector<8x16x8xf32>
    tpu.vector_store %arg9[%c1_15, %c1_16, %c0_17], %9 {strides = array<i32>} : memref<10x18x8xf32, #tpu.memory_space<vmem>>, vector<8x16x8xf32>,
    %c0_i32 = arith.constant 0 : i32
    %11 = arith.cmpi sgt, %arg1, %c0_i32 : i32
    %12 = arith.extui %11 : i1 to i32
    %c0_i32_18 = arith.constant 0 : i32
    %13 = arith.cmpi ne, %12, %c0_i32_18 : i32
    scf.if %13 {
      %c0_100 = arith.constant 0 : index
      %c0_101 = arith.constant 0 : index
      %c0_102 = arith.constant 0 : index
      %c0_103 = arith.constant 0 : index
      %83 = vector.load %arg3[%c0_100, %c0_101, %c0_102, %c0_103] : memref<1x1x16x8xf32, #tpu.memory_space<vmem>>, vector<1x1x16x8xf32>
      %84 = vector.shape_cast %83 : vector<1x1x16x8xf32> to vector<1x16x8xf32>
      %c0_104 = arith.constant 0 : index
      %c1_105 = arith.constant 1 : index
      %c0_106 = arith.constant 0 : index
      %85 = vector.load %arg9[%c0_104, %c1_105, %c0_106] : memref<10x18x8xf32, #tpu.memory_space<vmem>>, vector<1x16x8xf32>
      tpu.vector_store %arg9[%c0_104, %c1_105, %c0_106], %84 {strides = array<i32>} : memref<10x18x8xf32, #tpu.memory_space<vmem>>, vector<1x16x8xf32>,
    } else {
    }
    %c1_i32 = arith.constant 1 : i32
    %14 = arith.cmpi slt, %arg1, %c1_i32 : i32
    %15 = arith.extui %14 : i1 to i32
    %c0_i32_19 = arith.constant 0 : i32
    %16 = arith.cmpi ne, %15, %c0_i32_19 : i32
    scf.if %16 {
      %c0_100 = arith.constant 0 : index
      %c0_101 = arith.constant 0 : index
      %c0_102 = arith.constant 0 : index
      %c0_103 = arith.constant 0 : index
      %83 = vector.load %arg4[%c0_100, %c0_101, %c0_102, %c0_103] : memref<1x1x16x8xf32, #tpu.memory_space<vmem>>, vector<1x1x16x8xf32>
      %84 = vector.shape_cast %83 : vector<1x1x16x8xf32> to vector<1x16x8xf32>
      %c9_104 = arith.constant 9 : index
      %c1_105 = arith.constant 1 : index
      %c0_106 = arith.constant 0 : index
      %85 = vector.load %arg9[%c9_104, %c1_105, %c0_106] : memref<10x18x8xf32, #tpu.memory_space<vmem>>, vector<1x16x8xf32>
      tpu.vector_store %arg9[%c9_104, %c1_105, %c0_106], %84 {strides = array<i32>} : memref<10x18x8xf32, #tpu.memory_space<vmem>>, vector<1x16x8xf32>,
    } else {
    }
    %c0_20 = arith.constant 0 : index
    %c0_21 = arith.constant 0 : index
    %c0_22 = arith.constant 0 : index
    %17 = vector.load %arg9[%c0_20, %c0_21, %c0_22] : memref<10x18x8xf32, #tpu.memory_space<vmem>>, vector<8x16x8xf32>
    %18 = vector.shape_cast %17 : vector<8x16x8xf32> to vector<128x8xf32>
    %c0_23 = arith.constant 0 : index
    %c0_24 = arith.constant 0 : index
    %c0_25 = arith.constant 0 : index
    %c0_26 = arith.constant 0 : index
    %19 = vector.load %arg5[%c0_23, %c0_24, %c0_25, %c0_26] : memref<3x3x8x8xf32, #tpu.memory_space<vmem>>, vector<1x1x8x8xf32>
    %20 = vector.shape_cast %19 : vector<1x1x8x8xf32> to vector<8x8xf32>
    %cst_27 = arith.constant dense<0.000000e+00> : vector<128x8xf32>
    %21 = tpu.matmul %18, %20, %cst_27 {dimension_numbers = #tpu.dot_dimension_numbers<[1], [0], [0], [1], [0, 0, 1, 1], [], []>} : vector<128x8xf32>, vector<8x8xf32>, vector<128x8xf32> -> vector<128x8xf32>
    %c0_28 = arith.constant 0 : index
    %c1_29 = arith.constant 1 : index
    %c0_30 = arith.constant 0 : index
    %22 = vector.load %arg9[%c0_28, %c1_29, %c0_30] : memref<10x18x8xf32, #tpu.memory_space<vmem>>, vector<8x16x8xf32>
    %23 = vector.shape_cast %22 : vector<8x16x8xf32> to vector<128x8xf32>
    %c0_31 = arith.constant 0 : index
    %c1_32 = arith.constant 1 : index
    %c0_33 = arith.constant 0 : index
    %c0_34 = arith.constant 0 : index
    %24 = vector.load %arg5[%c0_31, %c1_32, %c0_33, %c0_34] : memref<3x3x8x8xf32, #tpu.memory_space<vmem>>, vector<1x1x8x8xf32>
    %25 = vector.shape_cast %24 : vector<1x1x8x8xf32> to vector<8x8xf32>
    %cst_35 = arith.constant dense<0.000000e+00> : vector<128x8xf32>
    %26 = tpu.matmul %23, %25, %cst_35 {dimension_numbers = #tpu.dot_dimension_numbers<[1], [0], [0], [1], [0, 0, 1, 1], [], []>} : vector<128x8xf32>, vector<8x8xf32>, vector<128x8xf32> -> vector<128x8xf32>
    %27 = arith.addf %21, %26 : vector<128x8xf32>
    %c0_36 = arith.constant 0 : index
    %c2 = arith.constant 2 : index
    %c0_37 = arith.constant 0 : index
    %28 = vector.load %arg9[%c0_36, %c2, %c0_37] : memref<10x18x8xf32, #tpu.memory_space<vmem>>, vector<8x16x8xf32>
    %29 = vector.shape_cast %28 : vector<8x16x8xf32> to vector<128x8xf32>
    %c0_38 = arith.constant 0 : index
    %c2_39 = arith.constant 2 : index
    %c0_40 = arith.constant 0 : index
    %c0_41 = arith.constant 0 : index
    %30 = vector.load %arg5[%c0_38, %c2_39, %c0_40, %c0_41] : memref<3x3x8x8xf32, #tpu.memory_space<vmem>>, vector<1x1x8x8xf32>
    %31 = vector.shape_cast %30 : vector<1x1x8x8xf32> to vector<8x8xf32>
    %cst_42 = arith.constant dense<0.000000e+00> : vector<128x8xf32>
    %32 = tpu.matmul %29, %31, %cst_42 {dimension_numbers = #tpu.dot_dimension_numbers<[1], [0], [0], [1], [0, 0, 1, 1], [], []>} : vector<128x8xf32>, vector<8x8xf32>, vector<128x8xf32> -> vector<128x8xf32>
    %33 = arith.addf %27, %32 : vector<128x8xf32>
    %c1_43 = arith.constant 1 : index
    %c0_44 = arith.constant 0 : index
    %c0_45 = arith.constant 0 : index
    %34 = vector.load %arg9[%c1_43, %c0_44, %c0_45] : memref<10x18x8xf32, #tpu.memory_space<vmem>>, vector<8x16x8xf32>
    %35 = vector.shape_cast %34 : vector<8x16x8xf32> to vector<128x8xf32>
    %c1_46 = arith.constant 1 : index
    %c0_47 = arith.constant 0 : index
    %c0_48 = arith.constant 0 : index
    %c0_49 = arith.constant 0 : index
    %36 = vector.load %arg5[%c1_46, %c0_47, %c0_48, %c0_49] : memref<3x3x8x8xf32, #tpu.memory_space<vmem>>, vector<1x1x8x8xf32>
    %37 = vector.shape_cast %36 : vector<1x1x8x8xf32> to vector<8x8xf32>
    %cst_50 = arith.constant dense<0.000000e+00> : vector<128x8xf32>
    %38 = tpu.matmul %35, %37, %cst_50 {dimension_numbers = #tpu.dot_dimension_numbers<[1], [0], [0], [1], [0, 0, 1, 1], [], []>} : vector<128x8xf32>, vector<8x8xf32>, vector<128x8xf32> -> vector<128x8xf32>
    %39 = arith.addf %33, %38 : vector<128x8xf32>
    %c1_51 = arith.constant 1 : index
    %c1_52 = arith.constant 1 : index
    %c0_53 = arith.constant 0 : index
    %40 = vector.load %arg9[%c1_51, %c1_52, %c0_53] : memref<10x18x8xf32, #tpu.memory_space<vmem>>, vector<8x16x8xf32>
    %41 = vector.shape_cast %40 : vector<8x16x8xf32> to vector<128x8xf32>
    %c1_54 = arith.constant 1 : index
    %c1_55 = arith.constant 1 : index
    %c0_56 = arith.constant 0 : index
    %c0_57 = arith.constant 0 : index
    %42 = vector.load %arg5[%c1_54, %c1_55, %c0_56, %c0_57] : memref<3x3x8x8xf32, #tpu.memory_space<vmem>>, vector<1x1x8x8xf32>
    %43 = vector.shape_cast %42 : vector<1x1x8x8xf32> to vector<8x8xf32>
    %cst_58 = arith.constant dense<0.000000e+00> : vector<128x8xf32>
    %44 = tpu.matmul %41, %43, %cst_58 {dimension_numbers = #tpu.dot_dimension_numbers<[1], [0], [0], [1], [0, 0, 1, 1], [], []>} : vector<128x8xf32>, vector<8x8xf32>, vector<128x8xf32> -> vector<128x8xf32>
    %45 = arith.addf %39, %44 : vector<128x8xf32>
    %c1_59 = arith.constant 1 : index
    %c2_60 = arith.constant 2 : index
    %c0_61 = arith.constant 0 : index
    %46 = vector.load %arg9[%c1_59, %c2_60, %c0_61] : memref<10x18x8xf32, #tpu.memory_space<vmem>>, vector<8x16x8xf32>
    %47 = vector.shape_cast %46 : vector<8x16x8xf32> to vector<128x8xf32>
    %c1_62 = arith.constant 1 : index
    %c2_63 = arith.constant 2 : index
    %c0_64 = arith.constant 0 : index
    %c0_65 = arith.constant 0 : index
    %48 = vector.load %arg5[%c1_62, %c2_63, %c0_64, %c0_65] : memref<3x3x8x8xf32, #tpu.memory_space<vmem>>, vector<1x1x8x8xf32>
    %49 = vector.shape_cast %48 : vector<1x1x8x8xf32> to vector<8x8xf32>
    %cst_66 = arith.constant dense<0.000000e+00> : vector<128x8xf32>
    %50 = tpu.matmul %47, %49, %cst_66 {dimension_numbers = #tpu.dot_dimension_numbers<[1], [0], [0], [1], [0, 0, 1, 1], [], []>} : vector<128x8xf32>, vector<8x8xf32>, vector<128x8xf32> -> vector<128x8xf32>
    %51 = arith.addf %45, %50 : vector<128x8xf32>
    %c2_67 = arith.constant 2 : index
    %c0_68 = arith.constant 0 : index
    %c0_69 = arith.constant 0 : index
    %52 = vector.load %arg9[%c2_67, %c0_68, %c0_69] : memref<10x18x8xf32, #tpu.memory_space<vmem>>, vector<8x16x8xf32>
    %53 = vector.shape_cast %52 : vector<8x16x8xf32> to vector<128x8xf32>
    %c2_70 = arith.constant 2 : index
    %c0_71 = arith.constant 0 : index
    %c0_72 = arith.constant 0 : index
    %c0_73 = arith.constant 0 : index
    %54 = vector.load %arg5[%c2_70, %c0_71, %c0_72, %c0_73] : memref<3x3x8x8xf32, #tpu.memory_space<vmem>>, vector<1x1x8x8xf32>
    %55 = vector.shape_cast %54 : vector<1x1x8x8xf32> to vector<8x8xf32>
    %cst_74 = arith.constant dense<0.000000e+00> : vector<128x8xf32>
    %56 = tpu.matmul %53, %55, %cst_74 {dimension_numbers = #tpu.dot_dimension_numbers<[1], [0], [0], [1], [0, 0, 1, 1], [], []>} : vector<128x8xf32>, vector<8x8xf32>, vector<128x8xf32> -> vector<128x8xf32>
    %57 = arith.addf %51, %56 : vector<128x8xf32>
    %c2_75 = arith.constant 2 : index
    %c1_76 = arith.constant 1 : index
    %c0_77 = arith.constant 0 : index
    %58 = vector.load %arg9[%c2_75, %c1_76, %c0_77] : memref<10x18x8xf32, #tpu.memory_space<vmem>>, vector<8x16x8xf32>
    %59 = vector.shape_cast %58 : vector<8x16x8xf32> to vector<128x8xf32>
    %c2_78 = arith.constant 2 : index
    %c1_79 = arith.constant 1 : index
    %c0_80 = arith.constant 0 : index
    %c0_81 = arith.constant 0 : index
    %60 = vector.load %arg5[%c2_78, %c1_79, %c0_80, %c0_81] : memref<3x3x8x8xf32, #tpu.memory_space<vmem>>, vector<1x1x8x8xf32>
    %61 = vector.shape_cast %60 : vector<1x1x8x8xf32> to vector<8x8xf32>
    %cst_82 = arith.constant dense<0.000000e+00> : vector<128x8xf32>
    %62 = tpu.matmul %59, %61, %cst_82 {dimension_numbers = #tpu.dot_dimension_numbers<[1], [0], [0], [1], [0, 0, 1, 1], [], []>} : vector<128x8xf32>, vector<8x8xf32>, vector<128x8xf32> -> vector<128x8xf32>
    %63 = arith.addf %57, %62 : vector<128x8xf32>
    %c2_83 = arith.constant 2 : index
    %c2_84 = arith.constant 2 : index
    %c0_85 = arith.constant 0 : index
    %64 = vector.load %arg9[%c2_83, %c2_84, %c0_85] : memref<10x18x8xf32, #tpu.memory_space<vmem>>, vector<8x16x8xf32>
    %65 = vector.shape_cast %64 : vector<8x16x8xf32> to vector<128x8xf32>
    %c2_86 = arith.constant 2 : index
    %c2_87 = arith.constant 2 : index
    %c0_88 = arith.constant 0 : index
    %c0_89 = arith.constant 0 : index
    %66 = vector.load %arg5[%c2_86, %c2_87, %c0_88, %c0_89] : memref<3x3x8x8xf32, #tpu.memory_space<vmem>>, vector<1x1x8x8xf32>
    %67 = vector.shape_cast %66 : vector<1x1x8x8xf32> to vector<8x8xf32>
    %cst_90 = arith.constant dense<0.000000e+00> : vector<128x8xf32>
    %68 = tpu.matmul %65, %67, %cst_90 {dimension_numbers = #tpu.dot_dimension_numbers<[1], [0], [0], [1], [0, 0, 1, 1], [], []>} : vector<128x8xf32>, vector<8x8xf32>, vector<128x8xf32> -> vector<128x8xf32>
    %69 = arith.addf %63, %68 : vector<128x8xf32>
    %c0_91 = arith.constant 0 : index
    %c0_92 = arith.constant 0 : index
    %70 = vector.load %arg6[%c0_91, %c0_92] : memref<1x8xf32, #tpu.memory_space<vmem>>, vector<1x8xf32>
    %71 = vector.broadcast %70 : vector<1x8xf32> to vector<128x8xf32>
    %72 = arith.addf %69, %71 : vector<128x8xf32>
    %c0_93 = arith.constant 0 : index
    %c0_94 = arith.constant 0 : index
    %c0_95 = arith.constant 0 : index
    %73 = vector.load %arg7[%c0_93, %c0_94, %c0_95] : memref<1x1x8xf32, #tpu.memory_space<vmem>>, vector<1x1x8xf32>
    %74 = vector.shape_cast %73 : vector<1x1x8xf32> to vector<1x8xf32>
    %75 = vector.shape_cast %9 : vector<8x16x8xf32> to vector<128x8xf32>
    %76 = vector.broadcast %74 : vector<1x8xf32> to vector<128x8xf32>
    %77 = arith.mulf %76, %75 : vector<128x8xf32>
    %78 = arith.addf %72, %77 : vector<128x8xf32>
    %79 = vector.shape_cast %78 : vector<128x8xf32> to vector<8x16x8xf32>
    %c0_96 = arith.constant 0 : index
    %c0_97 = arith.constant 0 : index
    %c0_98 = arith.constant 0 : index
    %c0_99 = arith.constant 0 : index
    %80 = vector.load %arg8[%c0_96, %c0_97, %c0_98, %c0_99] : memref<1x8x16x8xf32, #tpu.memory_space<vmem>>, vector<1x8x16x8xf32>
    %81 = vector.shape_cast %80 : vector<1x8x16x8xf32> to vector<8x16x8xf32>
    %82 = vector.shape_cast %79 : vector<8x16x8xf32> to vector<1x8x16x8xf32>
    tpu.vector_store %arg8[%c0_96, %c0_97, %c0_98, %c0_99], %82 {strides = array<i32>} : memref<1x8x16x8xf32, #tpu.memory_space<vmem>>, vector<1x8x16x8xf32>,
    return
  }
  func.func @transform_0(%arg0: i32, %arg1: i32) -> (i32, i32, i32, i32) {
    %c0_i32 = arith.constant 0 : i32
    %c0_i32_0 = arith.constant 0 : i32
    %c0_i32_1 = arith.constant 0 : i32
    return %arg0, %arg1, %c0_i32, %c0_i32_0 : i32, i32, i32, i32
  }
  func.func @transform_1(%arg0: i32, %arg1: i32) -> (i32, i32, i32, i32) {
    %c8_i32 = arith.constant 8 : i32
    %0 = arith.muli %arg1, %c8_i32 : i32
    %c1_i32 = arith.constant 1 : i32
    %1 = arith.subi %0, %c1_i32 : i32
    %c0_i32 = arith.constant 0 : i32
    %2 = arith.maxsi %1, %c0_i32 : i32
    %c0_i32_0 = arith.constant 0 : i32
    %c0_i32_1 = arith.constant 0 : i32
    %c0_i32_2 = arith.constant 0 : i32
    return %arg0, %2, %c0_i32_0, %c0_i32_1 : i32, i32, i32, i32
  }
  func.func @transform_2(%arg0: i32, %arg1: i32) -> (i32, i32, i32, i32) {
    %c8_i32 = arith.constant 8 : i32
    %0 = arith.muli %arg1, %c8_i32 : i32
    %c8_i32_0 = arith.constant 8 : i32
    %1 = arith.addi %0, %c8_i32_0 : i32
    %c15_i32 = arith.constant 15 : i32
    %2 = arith.minsi %1, %c15_i32 : i32
    %c0_i32 = arith.constant 0 : i32
    %c0_i32_1 = arith.constant 0 : i32
    %c0_i32_2 = arith.constant 0 : i32
    return %arg0, %2, %c0_i32, %c0_i32_1 : i32, i32, i32, i32
  }
  func.func @transform_3(%arg0: i32, %arg1: i32) -> (i32, i32, i32, i32) {
    %c0_i32 = arith.constant 0 : i32
    %c0_i32_0 = arith.constant 0 : i32
    %c0_i32_1 = arith.constant 0 : i32
    %c0_i32_2 = arith.constant 0 : i32
    %c0_i32_3 = arith.constant 0 : i32
    return %c0_i32, %c0_i32_0, %c0_i32_1, %c0_i32_2 : i32, i32, i32, i32
  }
  func.func @transform_4(%arg0: i32, %arg1: i32) -> (i32, i32) {
    %c0_i32 = arith.constant 0 : i32
    %c0_i32_0 = arith.constant 0 : i32
    %c0_i32_1 = arith.constant 0 : i32
    return %c0_i32, %c0_i32_0 : i32, i32
  }
  func.func @transform_5(%arg0: i32, %arg1: i32) -> (i32, i32, i32) {
    %c0_i32 = arith.constant 0 : i32
    %c0_i32_0 = arith.constant 0 : i32
    %c0_i32_1 = arith.constant 0 : i32
    return %arg0, %c0_i32, %c0_i32_0 : i32, i32, i32
  }
  func.func @transform_6(%arg0: i32, %arg1: i32) -> (i32, i32, i32, i32) {
    %c0_i32 = arith.constant 0 : i32
    %c0_i32_0 = arith.constant 0 : i32
    %c0_i32_1 = arith.constant 0 : i32
    return %arg0, %arg1, %c0_i32, %c0_i32_0 : i32, i32, i32, i32
  }
}

</mosaic_0001>

<bundles_post_ra>
// kernel: tpu_custom_call.1
= control target key start
LH: loop header
LB: loop body
LE: loop exit
PB: predicated region body
PF: predicated region fallthrough
CT: control target
= control target key end

     0   :  { %s3579_s21 = smov 0   ;;  %s3581_s22 = smov 0   ;;  %s4277_s0 = inlined_call_operand.vmem [shape: f32[2,16,16,8], index: 0, kind: input, shape index: {}]   ;;  %s4278_s1 = inlined_call_operand.vmem [shape: f32[2,16,16,8], index: 1, kind: input, shape index: {}]   ;;  %s4279_s2 = inlined_call_operand.vmem [shape: f32[2,16,16,8], index: 2, kind: input, shape index: {}]   ;;  %s4280_s3 = inlined_call_operand.vmem [shape: f32[3,3,8,8], index: 3, kind: input, shape index: {}]   ;;  %s4281_s4 = inlined_call_operand.vmem [shape: f32[1,8], index: 4, kind: input, shape index: {}]   ;;  %s4282_s5 = inlined_call_operand.vmem [shape: f32[2,1,8], index: 5, kind: input, shape index: {}]   ;;  %s4283_s6 = inlined_call_operand.vmem [shape: f32[2,16,16,8], index: 6, kind: output, shape index: {}]  }
   0x1   :  { %s3583_s23 = smov 0   ;;  %s3585_s24 = smov 0  }
   0x2   :  { %s3587_s25 = smov 0  }
   0x3 LB: > { %s25_s26 = sadd.s32 1, %s3533_s23  ;;  %s28_s27 = sadd.s32 1, %s3537_s24  ;;  %s3541_s25 = sphi %s3587_s25, %s16_s25   ;;  %s3537_s24 = sphi %s3585_s24, %s4288_s24   ;;  %s3533_s23 = sphi %s3583_s23, %s4287_s23   ;;  %s3529_s22 = sphi %s3581_s22, %s4286_s22   ;;  %s3525_s21 = sphi %s3579_s21, %s4285_s21  }
   0x4   : > { %p26_p0 = scmp.ge.s32.totalorder %s25_s26, 2  ;;  %p2759_p1 = scmp.ge.s32.totalorder %s3541_s25, 1 }
   0x5   : > { %p306_p2 = scmp.lt.s32.totalorder %s3541_s25, 5 }
   0x6   : > { %s4290_s26 = smov (%p26_p0, %s25_s26), 0  ;;  %s4292_s27 = smov (!%p26_p0, %s28_s27), %s3537_s24 }
   0x7   : > { %p307_p3 = pnand %p2759_p1, %p306_p2  ;;  %p30_p4 = scmp.ge.s32.totalorder %s4292_s27, 2 }
   0x8   : > { %vm434_vm0 = vcmask (!%p307_p3), 57344   ;;  %vm455_vm1 = vcmask (!%p307_p3), 64512   ;;  %s3614_s28 = sshll.u32 (!%p307_p3), %s3525_s21, 3  ;;  %p376_p5 = scmp.lt.s32.totalorder (!%p307_p3), %s3529_s22, 1  ;;  %v3543_v0 = vmov (!%p307_p3), 0.0  }
   0x9   : > { %s4294_s27 = smov (%p30_p4, %s4292_s27), 0  ;;  %310 = sbr.rel (%p307_p3) target bundleno = 407 (0x197), region = 44 }
   0xa   : > { %435 = vst.msk [vmem:[#allocation2] sm:$0x1] (!%p307_p3), %vm434_vm0, %v3543_v0  ;;  %436 = vst.msk [vmem:[#allocation2 + $0x18] sm:$0x1] (!%p307_p3), %vm434_vm0, %v3543_v0  ;;  %p378_p6 = scmp.lt.s32.totalorder (!%p307_p3), %s3614_s28, 15  ;;  %s2765_s29 = sadd.s32 (!%p307_p3), 4294967295, %s3614_s28 }
   0xb   : > { %437 = vst.msk [vmem:[#allocation2 + $0x30] sm:$0x1] (!%p307_p3), %vm434_vm0, %v3543_v0  ;;  %438 = vst.msk [vmem:[#allocation2 + $0x48] sm:$0x1] (!%p307_p3), %vm434_vm0, %v3543_v0  ;;  %p388_p7 = scmp.gt.s32.totalorder (!%p307_p3), %s2765_s29, 0  ;;  %p2766_p8 = scmp.lt.s32.totalorder (!%p307_p3), %s2765_s29, 15 }
   0xc   : > { %439 = vst.msk [vmem:[#allocation2 + $0x60] sm:$0x1] (!%p307_p3), %vm434_vm0, %v3543_v0  ;;  %440 = vst.msk [vmem:[#allocation2 + $0x78] sm:$0x1] (!%p307_p3), %vm434_vm0, %v3543_v0  ;;  %s404_s10 = sadd.s32 (!%p307_p3), 8, %s3614_s28  ;;  %p2785_p10 = scmp.le.s32.totalorder (!%p307_p3), %s3525_s21, 0 }
   0xd   : > { %441 = vst.msk [vmem:[#allocation2 + $0x90] sm:$0x1] (!%p307_p3), %vm434_vm0, %v3543_v0  ;;  %442 = vst.msk [vmem:[#allocation2 + $0xa8] sm:$0x1] (!%p307_p3), %vm434_vm0, %v3543_v0  ;;  %p3657_p9 = scmp.lt.s32.totalorder (!%p307_p3), %s404_s10, 15 }
   0xe   : > { %443 = vst.msk [vmem:[#allocation2 + $0xc0] sm:$0x1] (!%p307_p3), %vm434_vm0, %v3543_v0  ;;  %444 = vst.msk [vmem:[#allocation2 + $0xd8] sm:$0x1] (!%p307_p3), %vm434_vm0, %v3543_v0 }
   0xf   : > { %445 = vst.msk [vmem:[#allocation2 + $0x11] sm:$0x1] (!%p307_p3), %vm434_vm0, %v3543_v0  ;;  %446 = vst.msk [vmem:[#allocation2 + $0x29] sm:$0x1] (!%p307_p3), %vm434_vm0, %v3543_v0 }
  0x10   : > { %447 = vst.msk [vmem:[#allocation2 + $0x41] sm:$0x1] %vm434_vm0, %v3543_v0  ;;  %448 = vst.msk [vmem:[#allocation2 + $0x59] sm:$0x1] %vm434_vm0, %v3543_v0  ;;  %s4296_s22 = smov (!%p376_p5, %s3529_s22), 1  ;;  %s4298_s10 = smov (!%p3657_p9, %s404_s10), 15 }
  0x11   : > { %449 = vst.msk [vmem:[#allocation2 + $0x71] sm:$0x1] %vm434_vm0, %v3543_v0  ;;  %450 = vst.msk [vmem:[#allocation2 + $0x89] sm:$0x1] %vm434_vm0, %v3543_v0  ;;  %s379_s30 = scalar_select %p378_p6, %s3614_s28, 15 }
  0x12   : > { %451 = vst.msk [vmem:[#allocation2 + $0xa1] sm:$0x1] %vm434_vm0, %v3543_v0  ;;  %452 = vst.msk [vmem:[#allocation2 + $0xb9] sm:$0x1] %vm434_vm0, %v3543_v0  ;;  %s3650_s7 = sshll.u32 %s4296_s22, 5  ;;  %s422_s18 = scalar_lea.vmem %s4282_s5, %s4296_s22 }
  0x13   : > { %453 = vst.msk [vmem:[#allocation2 + $0xd1] sm:$0x1] %vm434_vm0, %v3543_v0  ;;  %454 = vst.msk [vmem:[#allocation2 + $0xe9] sm:$0x1] %vm434_vm0, %v3543_v0  ;;  %s2761_s8 = sshll.u32 %s379_s30, 1  ;;  %s4302_s10 = smov (!%p3657_p9, %s4298_s10), 15 }
  0x14   : > { %456 = vst.msk [vmem:[#allocation2 + $0x1] sm:$0xff] %vm455_vm1, %v3543_v0  ;;  %457 = vst.msk [vmem:[#allocation2 + $0x9] sm:$0xff] %vm455_vm1, %v3543_v0  ;;  %s3653_s9 = sadd.s32 %s3650_s7, %s2761_s8 }
  0x15   : > { %459 = vst.msk [vmem:[#allocation2 + $0xd9] sm:$0xff] %vm455_vm1, %v3543_v0  ;;  %460 = vst.msk [vmem:[#allocation2 + $0xe1] sm:$0xff] %vm455_vm1, %v3543_v0  ;;  %s2763_s11 = sshll.u32 %s3653_s9, 3  ;;  %s2778_s9 = sshll.u32 %s4302_s10, 1 }
  0x16   : > { %s3666_s15 = scalar_lea.vmem %s4277_s0, %s2763_s11  ;;  %s3739_s30 = scalar_lea.vmem %s4283_s6, %s2763_s11 }
  0x17   : > { %s389_s19 = scalar_select %p388_p7, %s2765_s29, 0  ;;  %v3673_v1 = vld [vmem:[%s3666_s15] sm:$0xff]  ;;  %v3676_v2 = vld [vmem:[%s3666_s15 + $0x8] sm:$0xff]  ;;  %v3679_v3 = vld [vmem:[%s3666_s15 + $0x10] sm:$0xff] }
  0x18   : > { %478 = vst.msk [vmem:[#allocation2 + $0x19] sm:$0xff] %vm455_vm1, %v3673_v1  ;;  %479 = vst.msk [vmem:[#allocation2 + $0x21] sm:$0xff] %vm455_vm1, %v3676_v2  ;;  %v3692_v4 = vld [vmem:[%s3666_s15 + $0x18] sm:$0xff]  ;;  %v3695_v5 = vld [vmem:[%s3666_s15 + $0x20] sm:$0xff]  ;;  %s413_s12 = sadd.s32 %s2778_s9, %s3650_s7 }
  0x19   : > { %480 = vst.msk [vmem:[#allocation2 + $0x31] sm:$0xff] %vm455_vm1, %v3679_v3  ;;  %v3698_v6 = vld [vmem:[%s3666_s15 + $0x28] sm:$0xff]  ;;  %s4300_s19 = smov (!%p2766_p8, %s389_s19), 15  ;;  %481 = vst.msk [vmem:[#allocation2 + $0x39] sm:$0xff] %vm455_vm1, %v3692_v4  ;;  %v3708_v7 = vld [vmem:[%s3666_s15 + $0x30] sm:$0xff]  ;;  %s2780_s16 = sshll.u32 %s413_s12, 3 }
  0x1a   : > { %482 = vst.msk [vmem:[#allocation2 + $0x49] sm:$0xff] %vm455_vm1, %v3695_v5  ;;  %483 = vst.msk [vmem:[#allocation2 + $0x51] sm:$0xff] %vm455_vm1, %v3698_v6  ;;  %v3711_v8 = vld [vmem:[%s3666_s15 + $0x38] sm:$0xff]  ;;  %v3714_v9 = vld [vmem:[%s3666_s15 + $0x40] sm:$0xff]  ;;  %s2771_s20 = sshll.u32 %s4300_s19, 1  ;;  %497 = sbr.rel (%p2785_p10) target bundleno = 33 (0x21), region = 48 }
  0x1b   : > { %484 = vst.msk [vmem:[#allocation2 + $0x61] sm:$0xff] %vm455_vm1, %v3708_v7  ;;  %485 = vst.msk [vmem:[#allocation2 + $0x69] sm:$0xff] %vm455_vm1, %v3711_v8  ;;  %v3726_v10 = vld [vmem:[%s3666_s15 + $0x48] sm:$0xff]  ;;  %v3729_v11 = vld [vmem:[%s3666_s15 + $0x50] sm:$0xff]  ;;  %s396_s8 = sadd.s32 %s2771_s20, %s3650_s7  ;;  %s415_s20 = scalar_lea.vmem %s4279_s2, %s2780_s16 }
  0x1c   : > { %486 = vst.msk [vmem:[#allocation2 + $0x79] sm:$0xff] %vm455_vm1, %v3714_v9  ;;  %v3732_v12 = vld [vmem:[%s3666_s15 + $0x58] sm:$0xff]  ;;  %487 = vst.msk [vmem:[#allocation2 + $0x81] sm:$0xff] %vm455_vm1, %v3726_v10  ;;  %v3748_v13 = vld [vmem:[%s3666_s15 + $0x60] sm:$0xff]  ;;  %s2773_s11 = sshll.u32 %s396_s8, 3 }
  0x1d   : > { %488 = vst.msk [vmem:[#allocation2 + $0x91] sm:$0xff] %vm455_vm1, %v3729_v11  ;;  %489 = vst.msk [vmem:[#allocation2 + $0x99] sm:$0xff] %vm455_vm1, %v3732_v12  ;;  %v3751_v14 = vld [vmem:[%s3666_s15 + $0x68] sm:$0xff]  ;;  %v3754_v15 = vld [vmem:[%s3666_s15 + $0x70] sm:$0xff]  ;;  %s398_s10 = scalar_lea.vmem %s4278_s1, %s2773_s11 }
  0x1e   : > { %490 = vst.msk [vmem:[#allocation2 + $0xa9] sm:$0xff] %vm455_vm1, %v3748_v13  ;;  %491 = vst.msk [vmem:[#allocation2 + $0xb1] sm:$0xff] %vm455_vm1, %v3751_v14  ;;  %v3764_v16 = vld [vmem:[%s3666_s15 + $0x78] sm:$0xff]  ;;  %v498_v17 = vld [vmem:[%s398_s10] sm:$0xff] (!%p2785_p10) }
  0x1f   : > { %492 = vst.msk [vmem:[#allocation2 + $0xc1] sm:$0xff] %vm455_vm1, %v3754_v15  ;;  %493 = vst.msk [vmem:[#allocation2 + $0xc9] sm:$0xff] %vm455_vm1, %v3764_v16  ;;  %v499_v18 = vld [vmem:[%s398_s10 + $0x8] sm:$0xff] (!%p2785_p10) }
  0x20   : > { %500 = vst.msk [vmem:[#allocation2 + $0x1] sm:$0xff] (!%p2785_p10), %vm455_vm1, %v498_v17  ;;  %501 = vst.msk [vmem:[#allocation2 + $0x9] sm:$0xff] (!%p2785_p10), %vm455_vm1, %v499_v18 }
  0x21 PF: > { %p2786_p11 = scmp.ge.s32.totalorder %s3525_s21, 1 }
  0x22   : > { %v506_v19 = vld [vmem:[%s415_s20] sm:$0xff] (!%p2786_p11)  ;;  %v507_v20 = vld [vmem:[%s415_s20 + $0x8] sm:$0xff] (!%p2786_p11) }
  0x23   : > { %505 = sbr.rel (%p2786_p11) target bundleno = 42 (0x2a), region = 52  ;;  %508 = vst.msk [vmem:[#allocation2 + $0xd9] sm:$0xff] (!%p2786_p11), %vm455_vm1, %v506_v19  ;;  %509 = vst.msk [vmem:[#allocation2 + $0xe1] sm:$0xff] (!%p2786_p11), %vm455_vm1, %v507_v20 }
  0x2a PF: > { %v2787_v21 = vld [vmem:[%s4280_s3 + $0x8] sm:$0xff]  ;;  %v3787_v22 = vld [vmem:[%s4280_s3 + $0x20] sm:$0xff]  ;;  %v3800_v29 = vld [vmem:[#allocation2 + $0x31] sm:$0xff] }
  0x2b   : > { %v527_v23 = vld [vmem:[#allocation2 + $0x1] sm:$0xff]  ;;  %3098 = vmatprep.subr.mxu1 %v2787_v21  ;;  %3202 = vmatprep.subr.mxu0 %v3787_v22  ;;  %v1385_v24 = vld [vmem:[#allocation2 + $0x19] sm:$0xff]  ;;  %v528_v25 = vld [vmem:[#allocation2 + $0x9] sm:$0xff] }
  0x2c   : > { %v526_v26 = vld [vmem:[%s4280_s3] sm:$0xff]  ;;  %3099 = vmatpush3.msra.mxu1 %v2787_v21  ;;  %3100 = vmatprep.mubr.msk.f32.mxu1 %vm455_vm1, %v527_v23  ;;  %v2871_v28 = vld [vmem:[%s4280_s3 + $0x28] sm:$0xff]  ;;  %v2888_v30 = vld [vmem:[%s4280_s3 + $0x30] sm:$0xff] }
  0x2d   : > { %v1386_v27 = vld [vmem:[#allocation2 + $0x21] sm:$0xff]  ;;  %3203 = vmatpush3.msra.mxu0 %v3787_v22  ;;  %3204 = vmatprep.mubr.msk.f32.mxu0 %vm455_vm1, %v1385_v24  ;;  %v3806_v31 = vld [vmem:[#allocation2 + $0x39] sm:$0xff]  ;;  %v3811_v32 = vld [vmem:[#allocation2 + $0x49] sm:$0xff] }
  0x2e   : > { %3101 = vmatmul.mubr.msk.f32.vlgmr.msra.gmra.mrb[0].mxu1 %vm455_vm1, %v528_v25  ;;  %3124 = vmatprep.subr.mxu1 %v526_v26  ;;  %v3820_v33 = vld [vmem:[#allocation2 + $0x51] sm:$0xff]  ;;  %v3825_v35 = vld [vmem:[#allocation2 + $0x61] sm:$0xff]  ;;  %v3835_v36 = vld [vmem:[#allocation2 + $0x69] sm:$0xff] }
  0x2f   : > { %3205 = vmatmul.mubr.msk.f32.vlgmr.msra.gmra.mrb[0].mxu0 %vm455_vm1, %v1386_v27  ;;  %3228 = vmatprep.subr.mxu0 %v2871_v28  ;;  %v2820_v34 = vld [vmem:[%s4280_s3 + $0x10] sm:$0xff]  ;;  %v3837_v37 = vld [vmem:[#allocation2 + $0x1a] sm:$0xff]  ;;  %v3847_v38 = vld [vmem:[#allocation2 + $0x22] sm:$0xff] }
  0x30   : > { %3125 = vmatpush3.msra.mxu1 %v526_v26  ;;  %3229 = vmatpush3.msra.mxu0 %v2871_v28  ;;  %v3849_v39 = vld [vmem:[#allocation2 + $0x79] sm:$0xff]  ;;  %v3864_v42 = vld [vmem:[#allocation2 + $0x81] sm:$0xff]  ;;  %v3870_v44 = vld [vmem:[#allocation2 + $0x91] sm:$0xff] }
  0x31   : > { %3103 = vmatprep.mubr.msk.f32.mxu1 %vm455_vm1, %v1385_v24  ;;  %3207 = vmatprep.mubr.msk.f32.mxu0 %vm455_vm1, %v3800_v29  ;;  %v3851_v40 = vld [vmem:[#allocation2 + $0x32] sm:$0xff]  ;;  %v3868_v43 = vld [vmem:[#allocation2 + $0x3a] sm:$0xff]  ;;  %v3872_v45 = vld [vmem:[#allocation2 + $0x4a] sm:$0xff] }
  0x32   : > { %3104 = vmatmul.mubr.msk.f32.gmra.mrb[2].mxu1 %vm455_vm1, %v1386_v27  ;;  %3254 = vmatprep.subr.mxu0 %v2888_v30  ;;  %v3858_v41 = vld [vmem:[%s4280_s3 + $0x38] sm:$0xff]  ;;  %v3887_v48 = vld [vmem:[#allocation2 + $0xa9] sm:$0xff]  ;;  %v510_v52 = vld [vmem:[#allocation2] sm:$0xff] }
  0x33   : > { %3208 = vmatmul.mubr.msk.f32.gmra.mrb[2].mxu0 %vm455_vm1, %v3806_v31  ;;  %3106 = vmatprep.mubr.msk.f32.mxu1 %vm455_vm1, %v3800_v29  ;;  %v3881_v46 = vld [vmem:[#allocation2 + $0x99] sm:$0xff]  ;;  %v3889_v49 = vld [vmem:[#allocation2 + $0x62] sm:$0xff]  ;;  %v3897_v50 = vld [vmem:[#allocation2 + $0xb1] sm:$0xff] }
  0x34   : > { %3210 = vmatprep.mubr.msk.f32.mxu0 %vm455_vm1, %v3811_v32  ;;  %3150 = vmatprep.subr.mxu1 %v2820_v34  ;;  %v3885_v47 = vld [vmem:[#allocation2 + $0x52] sm:$0xff]  ;;  %v3901_v51 = vld [vmem:[#allocation2 + $0x6a] sm:$0xff]  ;;  %v3903_v53 = vld [vmem:[#allocation2 + $0x7a] sm:$0xff] }
  0x35   : > { %v511_v54 = vld [vmem:[#allocation2 + $0x8] sm:$0xff]  ;;  %v3914_v56 = vld [vmem:[#allocation2 + $0x18] sm:$0xff]  ;;  %v3924_v59 = vld [vmem:[#allocation2 + $0x20] sm:$0xff] }
  0x36   : > { %3107 = vmatmul.mubr.msk.f32.gmra.mrb[4].mxu1 %vm455_vm1, %v3806_v31  ;;  %v3912_v55 = vld [vmem:[#allocation2 + $0x82] sm:$0xff]  ;;  %v3916_v57 = vld [vmem:[#allocation2 + $0x92] sm:$0xff]  ;;  %v3930_v60 = vld [vmem:[#allocation2 + $0x9a] sm:$0xff] }
  0x37   : > { %3211 = vmatmul.mubr.msk.f32.gmra.mrb[4].mxu0 %vm455_vm1, %v3820_v33  ;;  %3109 = vmatprep.mubr.msk.f32.mxu1 %vm455_vm1, %v3811_v32  ;;  %v2837_v58 = vld [vmem:[%s4280_s3 + $0x18] sm:$0xff]  ;;  %v3932_v61 = vld [vmem:[#allocation2 + $0x30] sm:$0xff]  ;;  %v3948_v17 = vld [vmem:[#allocation2 + $0x48] sm:$0xff] }
  0x38   : > { %3213 = vmatprep.mubr.msk.f32.mxu0 %vm455_vm1, %v3825_v35  ;;  %v3934_v62 = vld [vmem:[#allocation2 + $0xaa] sm:$0xff]  ;;  %v3942_v63 = vld [vmem:[#allocation2 + $0x38] sm:$0xff]  ;;  %v3950_v18 = vld [vmem:[#allocation2 + $0xc2] sm:$0xff] }
  0x39   : > { %v3946_v0 = vld [vmem:[#allocation2 + $0xb2] sm:$0xff]  ;;  %v3962_v20 = vld [vmem:[#allocation2 + $0xca] sm:$0xff]  ;;  %v3964_v21 = vld [vmem:[#allocation2 + $0x60] sm:$0xff] }
  0x3a   : > { %3110 = vmatmul.mubr.msk.f32.gmra.mrb[6].mxu1 %vm455_vm1, %v3820_v33  ;;  %v3958_v19 = vld [vmem:[#allocation2 + $0x50] sm:$0xff]  ;;  %v3972_v23 = vld [vmem:[#allocation2 + $0x68] sm:$0xff]  ;;  %v3976_v24 = vld [vmem:[#allocation2 + $0x78] sm:$0xff] }
  0x3b   : > { %3214 = vmatmul.mubr.msk.f32.gmra.mrb[6].mxu0 %vm455_vm1, %v3835_v36  ;;  %3112 = vmatprep.mubr.msk.f32.mxu1 %vm455_vm1, %v3825_v35  ;;  %v2922_v25 = vld [vmem:[%s4280_s3 + $0x40] sm:$0xff]  ;;  %v3992_v27 = vld [vmem:[#allocation2 + $0x90] sm:$0xff]  ;;  %v4000_v28 = vld [vmem:[#allocation2 + $0x98] sm:$0xff] }
  0x3c   : > { %3230 = vmatprep.mubr.msk.f32.mxu0 %vm455_vm1, %v3837_v37  ;;  %v3987_v26 = vld [vmem:[#allocation2 + $0x80] sm:$0xff] }
  0x3e   : > { %3113 = vmatmul.mubr.msk.f32.gmra.mrb[8].mxu1 %vm455_vm1, %v3835_v36 }
  0x3f   : > { %3231 = vmatmul.mubr.msk.f32.vlgmr.msra.gmra.mrb[0].mxu0 %vm455_vm1, %v3847_v38  ;;  %3115 = vmatprep.mubr.msk.f32.mxu1 %vm455_vm1, %v3849_v39 }
  0x40   : > { %3255 = vmatpush3.msra.mxu0 %v2888_v30  ;;  %3233 = vmatprep.mubr.msk.f32.mxu0 %vm455_vm1, %v3851_v40  ;;  %v4004_v30 = vld [vmem:[#allocation2 + $0xa8] sm:$0xff] }
  0x41   : > { %3280 = vmatprep.subr.mxu0 %v3858_v41 }
  0x42   : > { %3116 = vmatmul.mubr.msk.f32.gmra.mrb[10].mxu1 %vm455_vm1, %v3864_v42 }
  0x43   : > { %3234 = vmatmul.mubr.msk.f32.gmra.mrb[2].mxu0 %vm455_vm1, %v3868_v43  ;;  %3118 = vmatprep.mubr.msk.f32.mxu1 %vm455_vm1, %v3870_v44 }
  0x44   : > { %3236 = vmatprep.mubr.msk.f32.mxu0 %vm455_vm1, %v3872_v45 }
  0x46   : > { %3119 = vmatmul.mubr.msk.f32.gmra.mrb[12].mxu1 %vm455_vm1, %v3881_v46 }
  0x47   : > { %3237 = vmatmul.mubr.msk.f32.gmra.mrb[4].mxu0 %vm455_vm1, %v3885_v47  ;;  %3121 = vmatprep.mubr.msk.f32.mxu1 %vm455_vm1, %v3887_v48 }
  0x48   : > { %3239 = vmatprep.mubr.msk.f32.mxu0 %vm455_vm1, %v3889_v49 }
  0x4a   : > { %3122 = vmatmul.mubr.msk.f32.gmra.mrb[14].mxu1 %vm455_vm1, %v3897_v50 }
  0x4b   : > { %3240 = vmatmul.mubr.msk.f32.gmra.mrb[6].mxu0 %vm455_vm1, %v3901_v51  ;;  %3126 = vmatprep.mubr.msk.f32.mxu1 %vm455_vm1, %v510_v52  ;;  %v932_v52 = vld [vmem:[#allocation2 + $0xa] sm:$0xff] }
  0x4c   : > { %3242 = vmatprep.mubr.msk.f32.mxu0 %vm455_vm1, %v3903_v53 }
  0x4e   : > { %3127 = vmatmul.mubr.msk.f32.vlgmr.msra.gmra.mrb[0].mxu1 %vm455_vm1, %v511_v54  ;;  %v4030_v54 = vld [vmem:[#allocation2 + $0xc0] sm:$0xff] }
  0x4f   : > { %3243 = vmatmul.mubr.msk.f32.gmra.mrb[8].mxu0 %vm455_vm1, %v3912_v55  ;;  %3151 = vmatpush3.msra.mxu1 %v2820_v34  ;;  %v4012_v34 = vld [vmem:[#allocation2 + $0xb0] sm:$0xff] }
  0x50   : > { %3129 = vmatprep.mubr.msk.f32.mxu1 %vm455_vm1, %v3914_v56  ;;  %3245 = vmatprep.mubr.msk.f32.mxu0 %vm455_vm1, %v3916_v57 }
  0x51   : > { %3176 = vmatprep.subr.mxu1 %v2837_v58 }
  0x52   : > { %3130 = vmatmul.mubr.msk.f32.gmra.mrb[2].mxu1 %vm455_vm1, %v3924_v59 }
  0x53   : > { %3246 = vmatmul.mubr.msk.f32.gmra.mrb[10].mxu0 %vm455_vm1, %v3930_v60  ;;  %3132 = vmatprep.mubr.msk.f32.mxu1 %vm455_vm1, %v3932_v61 }
  0x54   : > { %3248 = vmatprep.mubr.msk.f32.mxu0 %vm455_vm1, %v3934_v62 }
  0x56   : > { %3133 = vmatmul.mubr.msk.f32.gmra.mrb[4].mxu1 %vm455_vm1, %v3942_v63 }
  0x57   : > { %3249 = vmatmul.mubr.msk.f32.gmra.mrb[12].mxu0 %vm455_vm1, %v3946_v0  ;;  %3135 = vmatprep.mubr.msk.f32.mxu1 %vm455_vm1, %v3948_v17 }
  0x58   : > { %3251 = vmatprep.mubr.msk.f32.mxu0 %vm455_vm1, %v3950_v18 }
  0x5a   : > { %3136 = vmatmul.mubr.msk.f32.gmra.mrb[6].mxu1 %vm455_vm1, %v3958_v19 }
  0x5b   : > { %3252 = vmatmul.mubr.msk.f32.gmra.mrb[14].mxu0 %vm455_vm1, %v3962_v20  ;;  %3138 = vmatprep.mubr.msk.f32.mxu1 %vm455_vm1, %v3964_v21 }
  0x5c   : > { %3256 = vmatprep.mubr.msk.f32.mxu0 %vm455_vm1, %v3932_v61 }
  0x5e   : > { %3139 = vmatmul.mubr.msk.f32.gmra.mrb[8].mxu1 %vm455_vm1, %v3972_v23 }
  0x5f   : > { %3257 = vmatmul.mubr.msk.f32.vlgmr.msra.gmra.mrb[0].mxu0 %vm455_vm1, %v3942_v63  ;;  %3141 = vmatprep.mubr.msk.f32.mxu1 %vm455_vm1, %v3976_v24 }
  0x60   : > { %3281 = vmatpush3.msra.mxu0 %v3858_v41  ;;  %3259 = vmatprep.mubr.msk.f32.mxu0 %vm455_vm1, %v3948_v17  ;;  %v931_v41 = vld [vmem:[#allocation2 + $0x2] sm:$0xff] }
  0x61   : > { %3306 = vmatprep.subr.mxu0 %v2922_v25 }
  0x62   : > { %3142 = vmatmul.mubr.msk.f32.gmra.mrb[10].mxu1 %vm455_vm1, %v3987_v26 }
  0x63   : > { %3260 = vmatmul.mubr.msk.f32.gmra.mrb[2].mxu0 %vm455_vm1, %v3958_v19  ;;  %3144 = vmatprep.mubr.msk.f32.mxu1 %vm455_vm1, %v3992_v27 }
  0x64   : > { %3262 = vmatprep.mubr.msk.f32.mxu0 %vm455_vm1, %v3964_v21 }
  0x66   : > { %3145 = vmatmul.mubr.msk.f32.gmra.mrb[12].mxu1 %vm455_vm1, %v4000_v28 }
  0x67   : > { %3263 = vmatmul.mubr.msk.f32.gmra.mrb[4].mxu0 %vm455_vm1, %v3972_v23  ;;  %3147 = vmatprep.mubr.msk.f32.mxu1 %vm455_vm1, %v4004_v30 }
  0x68   : > { %3265 = vmatprep.mubr.msk.f32.mxu0 %vm455_vm1, %v3976_v24 }
  0x6a   : > { %3148 = vmatmul.mubr.msk.f32.gmra.mrb[14].mxu1 %vm455_vm1, %v4012_v34 }
  0x6b   : > { %3266 = vmatmul.mubr.msk.f32.gmra.mrb[6].mxu0 %vm455_vm1, %v3987_v26  ;;  %3152 = vmatprep.mubr.msk.f32.mxu1 %vm455_vm1, %v931_v41 }
  0x6c   : > { %3268 = vmatprep.mubr.msk.f32.mxu0 %vm455_vm1, %v3992_v27 }
  0x6e   : > { %3153 = vmatmul.mubr.msk.f32.vlgmr.msra.gmra.mrb[0].mxu1 %vm455_vm1, %v932_v52 }
  0x6f   : > { %3269 = vmatmul.mubr.msk.f32.gmra.mrb[8].mxu0 %vm455_vm1, %v4000_v28  ;;  %3177 = vmatpush3.msra.mxu1 %v2837_v58  ;;  %v1854_v58 = vld [vmem:[#allocation2 + $0xd8] sm:$0xff] }
  0x70   : > { %3155 = vmatprep.mubr.msk.f32.mxu1 %vm455_vm1, %v3837_v37  ;;  %3271 = vmatprep.mubr.msk.f32.mxu0 %vm455_vm1, %v4004_v30  ;;  %v1853_v37 = vld [vmem:[#allocation2 + $0xc8] sm:$0xff] }
  0x71   : > { %3332 = vmatprep.subr.mxu1 %v3787_v22 }
  0x72   : > { %3156 = vmatmul.mubr.msk.f32.gmra.mrb[2].mxu1 %vm455_vm1, %v3847_v38  ;;  %v1855_v38 = vld [vmem:[#allocation2 + $0xe0] sm:$0xff] }
  0x73   : > { %3272 = vmatmul.mubr.msk.f32.gmra.mrb[10].mxu0 %vm455_vm1, %v4012_v34  ;;  %3158 = vmatprep.mubr.msk.f32.mxu1 %vm455_vm1, %v3851_v40 }
  0x74   : > { %3274 = vmatprep.mubr.msk.f32.mxu0 %vm455_vm1, %v4030_v54 }
  0x76   : > { %3159 = vmatmul.mubr.msk.f32.gmra.mrb[4].mxu1 %vm455_vm1, %v3868_v43 }
  0x77   : > { %3275 = vmatmul.mubr.msk.f32.gmra.mrb[12].mxu0 %vm455_vm1, %v1853_v37  ;;  %3161 = vmatprep.mubr.msk.f32.mxu1 %vm455_vm1, %v3872_v45 }
  0x78   : > { %3277 = vmatprep.mubr.msk.f32.mxu0 %vm455_vm1, %v1854_v58 }
  0x7a   : > { %3162 = vmatmul.mubr.msk.f32.gmra.mrb[6].mxu1 %vm455_vm1, %v3885_v47 }
  0x7b   : > { %3278 = vmatmul.mubr.msk.f32.gmra.mrb[14].mxu0 %vm455_vm1, %v1855_v38  ;;  %3164 = vmatprep.mubr.msk.f32.mxu1 %vm455_vm1, %v3889_v49 }
  0x7c   : > { %3282 = vmatprep.mubr.msk.f32.mxu0 %vm455_vm1, %v3800_v29  ;;  %v2079_v29 = vld [vmem:[#allocation2 + $0xc1] sm:$0xff] }
  0x7e   : > { %3165 = vmatmul.mubr.msk.f32.gmra.mrb[8].mxu1 %vm455_vm1, %v3901_v51 }
  0x7f   : > { %3283 = vmatmul.mubr.msk.f32.vlgmr.msra.gmra.mrb[0].mxu0 %vm455_vm1, %v3806_v31  ;;  %3167 = vmatprep.mubr.msk.f32.mxu1 %vm455_vm1, %v3903_v53  ;;  %v2080_v31 = vld [vmem:[#allocation2 + $0xc9] sm:$0xff] }
  0x80   : > { %3307 = vmatpush3.msra.mxu0 %v2922_v25  ;;  %3285 = vmatprep.mubr.msk.f32.mxu0 %vm455_vm1, %v3811_v32  ;;  %v2082_v32 = vld [vmem:[#allocation2 + $0xe1] sm:$0xff] }
  0x82   : > { %3168 = vmatmul.mubr.msk.f32.gmra.mrb[10].mxu1 %vm455_vm1, %v3912_v55 }
  0x83   : > { %3286 = vmatmul.mubr.msk.f32.gmra.mrb[2].mxu0 %vm455_vm1, %v3820_v33  ;;  %3170 = vmatprep.mubr.msk.f32.mxu1 %vm455_vm1, %v3916_v57  ;;  %v2308_v33 = vld [vmem:[#allocation2 + $0xda] sm:$0xff] }
  0x84   : > { %3288 = vmatprep.mubr.msk.f32.mxu0 %vm455_vm1, %v3825_v35  ;;  %v2309_v35 = vld [vmem:[#allocation2 + $0xe2] sm:$0xff] }
  0x86   : > { %3171 = vmatmul.mubr.msk.f32.gmra.mrb[12].mxu1 %vm455_vm1, %v3930_v60 }
  0x87   : > { %3289 = vmatmul.mubr.msk.f32.gmra.mrb[4].mxu0 %vm455_vm1, %v3835_v36  ;;  %3173 = vmatprep.mubr.msk.f32.mxu1 %vm455_vm1, %v3934_v62 }
  0x88   : > { %3291 = vmatprep.mubr.msk.f32.mxu0 %vm455_vm1, %v3849_v39 }
  0x8a   : > { %3174 = vmatmul.mubr.msk.f32.gmra.mrb[14].mxu1 %vm455_vm1, %v3946_v0 }
  0x8b   : > { %3292 = vmatmul.mubr.msk.f32.gmra.mrb[6].mxu0 %vm455_vm1, %v3864_v42  ;;  %3178 = vmatprep.mubr.msk.f32.mxu1 %vm455_vm1, %v3914_v56 }
  0x8c   : > { %3294 = vmatprep.mubr.msk.f32.mxu0 %vm455_vm1, %v3870_v44 }
  0x8e   : > { %3179 = vmatmul.mubr.msk.f32.vlgmr.msra.gmra.mrb[0].mxu1 %vm455_vm1, %v3924_v59 }
  0x8f   : > { %3295 = vmatmul.mubr.msk.f32.gmra.mrb[8].mxu0 %vm455_vm1, %v3881_v46  ;;  %3333 = vmatpush3.msra.mxu1 %v3787_v22  ;;  %v2081_v22 = vld [vmem:[#allocation2 + $0xd9] sm:$0xff] }
  0x90   : > { %3181 = vmatprep.mubr.msk.f32.mxu1 %vm455_vm1, %v3932_v61  ;;  %3297 = vmatprep.mubr.msk.f32.mxu0 %vm455_vm1, %v3887_v48 }
  0x92   : > { %3182 = vmatmul.mubr.msk.f32.gmra.mrb[2].mxu1 %vm455_vm1, %v3942_v63 }
  0x93   : > { %3298 = vmatmul.mubr.msk.f32.gmra.mrb[10].mxu0 %vm455_vm1, %v3897_v50  ;;  %3184 = vmatprep.mubr.msk.f32.mxu1 %vm455_vm1, %v3948_v17 }
  0x94   : > { %3300 = vmatprep.mubr.msk.f32.mxu0 %vm455_vm1, %v2079_v29 }
  0x96   : > { %3185 = vmatmul.mubr.msk.f32.gmra.mrb[4].mxu1 %vm455_vm1, %v3958_v19 }
  0x97   : > { %3301 = vmatmul.mubr.msk.f32.gmra.mrb[12].mxu0 %vm455_vm1, %v2080_v31  ;;  %3187 = vmatprep.mubr.msk.f32.mxu1 %vm455_vm1, %v3964_v21 }
  0x98   : > { %3303 = vmatprep.mubr.msk.f32.mxu0 %vm455_vm1, %v2081_v22 }
  0x9a   : > { %3188 = vmatmul.mubr.msk.f32.gmra.mrb[6].mxu1 %vm455_vm1, %v3972_v23 }
  0x9b   : > { %3304 = vmatmul.mubr.msk.f32.gmra.mrb[14].mxu0 %vm455_vm1, %v2082_v32  ;;  %3190 = vmatprep.mubr.msk.f32.mxu1 %vm455_vm1, %v3976_v24 }
  0x9c   : > { %3308 = vmatprep.mubr.msk.f32.mxu0 %vm455_vm1, %v3851_v40 }
  0x9e   : > { %3191 = vmatmul.mubr.msk.f32.gmra.mrb[8].mxu1 %vm455_vm1, %v3987_v26 }
  0x9f   : > { %3309 = vmatmul.mubr.msk.f32.vlgmr.msra.gmra.mrb[0].mxu0 %vm455_vm1, %v3868_v43  ;;  %3193 = vmatprep.mubr.msk.f32.mxu1 %vm455_vm1, %v3992_v27 }
  0xa0   : > { %3311 = vmatprep.mubr.msk.f32.mxu0 %vm455_vm1, %v3872_v45 }
  0xa2   : > { %3194 = vmatmul.mubr.msk.f32.gmra.mrb[10].mxu1 %vm455_vm1, %v4000_v28 }
  0xa3   : > { %3312 = vmatmul.mubr.msk.f32.gmra.mrb[2].mxu0 %vm455_vm1, %v3885_v47  ;;  %3196 = vmatprep.mubr.msk.f32.mxu1 %vm455_vm1, %v4004_v30  ;;  %v4175_v47 = vld [vmem:[%s422_s18] ss:$0 sm:$0xff] }
  0xa4   : > { %3314 = vmatprep.mubr.msk.f32.mxu0 %vm455_vm1, %v3889_v49  ;;  %v4180_v49 = vld [vmem:[%s4281_s4] ss:$0 sm:$0xff]  ;;  %v2551_v56 = vmul.f32 %v4175_v47, %v3673_v1  ;;  %v2554_v63 = vmul.f32 %v4175_v47, %v3692_v4  ;;  %v2556_v4 = vmul.f32 %v4175_v47, %v3698_v6  ;;  %v2558_v6 = vmul.f32 %v4175_v47, %v3711_v8 }
  0xa6   : > { %3197 = vmatmul.mubr.msk.f32.gmra.mrb[12].mxu1 %vm455_vm1, %v4012_v34 }
  0xa7   : > { %3315 = vmatmul.mubr.msk.f32.gmra.mrb[4].mxu0 %vm455_vm1, %v3901_v51  ;;  %3199 = vmatprep.mubr.msk.f32.mxu1 %vm455_vm1, %v4030_v54  ;;  %v2552_v51 = vmul.f32 %v4175_v47, %v3676_v2 }
  0xa8   : > { %3317 = vmatprep.mubr.msk.f32.mxu0 %vm455_vm1, %v3903_v53 }
  0xaa   : > { %3200 = vmatmul.mubr.msk.f32.gmra.mrb[14].mxu1 %vm455_vm1, %v1853_v37 }
  0xab   : > { %3318 = vmatmul.mubr.msk.f32.gmra.mrb[6].mxu0 %vm455_vm1, %v3912_v55  ;;  %3216 = vmatprep.mubr.msk.f32.mxu1 %vm455_vm1, %v3849_v39 }
  0xac   : > { %3320 = vmatprep.mubr.msk.f32.mxu0 %vm455_vm1, %v3916_v57 }
  0xae   : > { %3217 = vmatmul.mubr.msk.f32.vlgmr.msra.gmra.mrb[8].mxu1 %vm455_vm1, %v3864_v42 }
  0xaf   : > { %3321 = vmatmul.mubr.msk.f32.gmra.mrb[8].mxu0 %vm455_vm1, %v3930_v60  ;;  %3219 = vmatprep.mubr.msk.f32.mxu1 %vm455_vm1, %v3870_v44 }
  0xb0   : > { %3323 = vmatprep.mubr.msk.f32.mxu0 %vm455_vm1, %v3934_v62 }
  0xb2   : > { %3220 = vmatmul.mubr.msk.f32.gmra.mrb[10].mxu1 %vm455_vm1, %v3881_v46 }
  0xb3   : > { %3324 = vmatmul.mubr.msk.f32.gmra.mrb[10].mxu0 %vm455_vm1, %v3946_v0  ;;  %3222 = vmatprep.mubr.msk.f32.mxu1 %vm455_vm1, %v3887_v48 }
  0xb4   : > { %3326 = vmatprep.mubr.msk.f32.mxu0 %vm455_vm1, %v3950_v18  ;;  %v2553_v18 = vmul.f32 %v4175_v47, %v3679_v3  ;;  %v2555_v3 = vmul.f32 %v4175_v47, %v3695_v5  ;;  %v2557_v5 = vmul.f32 %v4175_v47, %v3708_v7 }
  0xb6   : > { %3223 = vmatmul.mubr.msk.f32.gmra.mrb[12].mxu1 %vm455_vm1, %v3897_v50 }
  0xb7   : > { %3327 = vmatmul.mubr.msk.f32.gmra.mrb[12].mxu0 %vm455_vm1, %v3962_v20  ;;  %3225 = vmatprep.mubr.msk.f32.mxu1 %vm455_vm1, %v2079_v29 }
  0xb8   : > { %3329 = vmatprep.mubr.msk.f32.mxu0 %vm455_vm1, %v2308_v33  ;;  %v2560_v33 = vmul.f32 %v4175_v47, %v3726_v10 }
  0xba   : > { %3226 = vmatmul.mubr.msk.f32.gmra.mrb[14].mxu1 %vm455_vm1, %v2080_v31 }
  0xbb   : > { %3330 = vmatmul.mubr.msk.f32.gmra.mrb[14].mxu0 %vm455_vm1, %v2309_v35 }
 0x161   : > { %v3180_v36 = vpop.f32.mrb[0].mxu1 }
 0x162   : > { %v1290_v39 = vpop.f32.mrb[1].mxu1 }
 0x165   : > { %v3183_v40 = vpop.f32.mrb[2].mxu1 }
 0x166   : > { %v1300_v42 = vpop.f32.mrb[3].mxu1 }
 0x169   : > { %v3186_v43 = vpop.f32.mrb[4].mxu1 }
 0x16a   : > { %v1310_v44 = vpop.f32.mrb[5].mxu1 }
 0x16d   : > { %v3189_v45 = vpop.f32.mrb[6].mxu1 }
 0x16e   : > { %v1320_v46 = vpop.f32.mrb[7].mxu1 }
 0x172   : > { %v3310_v48 = vpop.f32.mrb[0].mxu0 }
 0x173   : > { %v3334_v50 = vadd.f32 %v3310_v48, %v3180_v36  ;;  %v2426_v53 = vpop.f32.mrb[1].mxu0  ;;  %v2562_v48 = vmul.f32 %v4175_v47, %v3732_v12 }
 0x174   : > { %v3335_v55 = vadd.f32 %v2426_v53, %v1290_v39  ;;  %v2559_v39 = vmul.f32 %v4175_v47, %v3714_v9  ;;  %v2561_v53 = vmul.f32 %v4175_v47, %v3729_v11 }
 0x175   : > { %v2529_v57 = vadd.f32 %v3334_v50, %v4180_v49 }
 0x176   : > { %v2528_v59 = vadd.f32 %v3335_v55, %v4180_v49  ;;  %v3313_v60 = vpop.f32.mrb[2].mxu0 }
 0x177   : > { %v2568_v61 = vadd.f32 %v2552_v51, %v2529_v57  ;;  %v3336_v62 = vadd.f32 %v3313_v60, %v3183_v40  ;;  %v2436_v0 = vpop.f32.mrb[3].mxu0 }
 0x178   : > { %v2567_v17 = vadd.f32 %v2551_v56, %v2528_v59  ;;  %v3337_v2 = vadd.f32 %v2436_v0, %v1300_v42 }
 0x179   : > { %2584 = vst.msk [vmem:[%s3739_s30 + $0x8] sm:$0xff] %vm455_vm1, %v2568_v61  ;;  %v2531_v1 = vadd.f32 %v3336_v62, %v4180_v49  ;;  %v2564_v62 = vmul.f32 %v4175_v47, %v3751_v14 }
 0x17a   : > { %2583 = vst.msk [vmem:[%s3739_s30] sm:$0xff] %vm455_vm1, %v2567_v17  ;;  %v2530_v19 = vadd.f32 %v3337_v2, %v4180_v49  ;;  %v3316_v20 = vpop.f32.mrb[4].mxu0  ;;  %v2563_v17 = vmul.f32 %v4175_v47, %v3748_v13 }
 0x17b   : > { %v2570_v21 = vadd.f32 %v2554_v63, %v2531_v1  ;;  %v3338_v23 = vadd.f32 %v3316_v20, %v3186_v43  ;;  %v2446_v24 = vpop.f32.mrb[5].mxu0 }
 0x17c   : > { %v2569_v25 = vadd.f32 %v2553_v18, %v2530_v19  ;;  %v3339_v26 = vadd.f32 %v2446_v24, %v1310_v44 }
 0x17d   : > { %2586 = vst.msk [vmem:[%s3739_s30 + $0x18] sm:$0xff] %vm455_vm1, %v2570_v21  ;;  %v2533_v27 = vadd.f32 %v3338_v23, %v4180_v49  ;;  %v2566_v23 = vmul.f32 %v4175_v47, %v3764_v16 }
 0x17e   : > { %2585 = vst.msk [vmem:[%s3739_s30 + $0x10] sm:$0xff] %vm455_vm1, %v2569_v25  ;;  %v2532_v28 = vadd.f32 %v3339_v26, %v4180_v49  ;;  %v3319_v30 = vpop.f32.mrb[6].mxu0  ;;  %v2565_v25 = vmul.f32 %v4175_v47, %v3754_v15 }
 0x17f   : > { %v2572_v34 = vadd.f32 %v2556_v4, %v2533_v27  ;;  %v3340_v41 = vadd.f32 %v3319_v30, %v3189_v45  ;;  %v2456_v52 = vpop.f32.mrb[7].mxu0 }
 0x180   : > { %v2571_v54 = vadd.f32 %v2555_v3, %v2532_v28  ;;  %v3341_v37 = vadd.f32 %v2456_v52, %v1320_v46 }
 0x181   : > { %2588 = vst.msk [vmem:[%s3739_s30 + $0x28] sm:$0xff] %vm455_vm1, %v2572_v34  ;;  %v2535_v58 = vadd.f32 %v3340_v41, %v4180_v49  ;;  %v3218_v38 = vpop.f32.mrb[8].mxu1 }
 0x182   : > { %2587 = vst.msk [vmem:[%s3739_s30 + $0x20] sm:$0xff] %vm455_vm1, %v2571_v54  ;;  %v2534_v29 = vadd.f32 %v3341_v37, %v4180_v49  ;;  %v3322_v31 = vpop.f32.mrb[8].mxu0  ;;  %v1557_v22 = vpop.f32.mrb[9].mxu1 }
 0x183   : > { %v2574_v8 = vadd.f32 %v2558_v6, %v2535_v58  ;;  %v3342_v32 = vadd.f32 %v3322_v31, %v3218_v38  ;;  %v2466_v35 = vpop.f32.mrb[9].mxu0 }
 0x184   : > { %v2573_v36 = vadd.f32 %v2557_v5, %v2534_v29  ;;  %v3343_v7 = vadd.f32 %v2466_v35, %v1557_v22 }
 0x185   : > { %2590 = vst.msk [vmem:[%s3739_s30 + $0x38] sm:$0xff] %vm455_vm1, %v2574_v8  ;;  %v2537_v40 = vadd.f32 %v3342_v32, %v4180_v49  ;;  %v3221_v42 = vpop.f32.mrb[10].mxu1 }
 0x186   : > { %2589 = vst.msk [vmem:[%s3739_s30 + $0x30] sm:$0xff] %vm455_vm1, %v2573_v36  ;;  %v2536_v43 = vadd.f32 %v3343_v7, %v4180_v49  ;;  %v3325_v44 = vpop.f32.mrb[10].mxu0  ;;  %v1567_v45 = vpop.f32.mrb[11].mxu1 }
 0x187   : > { %v2576_v10 = vadd.f32 %v2560_v33, %v2537_v40  ;;  %v3344_v46 = vadd.f32 %v3325_v44, %v3221_v42  ;;  %v2476_v50 = vpop.f32.mrb[11].mxu0 }
 0x188   : > { %v2575_v51 = vadd.f32 %v2559_v39, %v2536_v43  ;;  %v3345_v9 = vadd.f32 %v2476_v50, %v1567_v45 }
 0x189   : > { %2592 = vst.msk [vmem:[%s3739_s30 + $0x48] sm:$0xff] %vm455_vm1, %v2576_v10  ;;  %v2539_v55 = vadd.f32 %v3344_v46, %v4180_v49  ;;  %v3224_v56 = vpop.f32.mrb[12].mxu1 }
 0x18a   : > { %2591 = vst.msk [vmem:[%s3739_s30 + $0x40] sm:$0xff] %vm455_vm1, %v2575_v51  ;;  %v2538_v57 = vadd.f32 %v3345_v9, %v4180_v49  ;;  %v3328_v59 = vpop.f32.mrb[12].mxu0  ;;  %v1577_v60 = vpop.f32.mrb[13].mxu1 }
 0x18b   : > { %v2578_v12 = vadd.f32 %v2562_v48, %v2539_v55  ;;  %v3346_v61 = vadd.f32 %v3328_v59, %v3224_v56  ;;  %v2486_v63 = vpop.f32.mrb[13].mxu0 }
 0x18c   : > { %v2577_v0 = vadd.f32 %v2561_v53, %v2538_v57  ;;  %v3347_v11 = vadd.f32 %v2486_v63, %v1577_v60 }
 0x18d   : > { %2594 = vst.msk [vmem:[%s3739_s30 + $0x58] sm:$0xff] %vm455_vm1, %v2578_v12  ;;  %v2541_v2 = vadd.f32 %v3346_v61, %v4180_v49  ;;  %v3227_v18 = vpop.f32.mrb[14].mxu1 }
 0x18e   : > { %2593 = vst.msk [vmem:[%s3739_s30 + $0x50] sm:$0xff] %vm455_vm1, %v2577_v0  ;;  %v2540_v1 = vadd.f32 %v3347_v11, %v4180_v49  ;;  %v3331_v19 = vpop.f32.mrb[14].mxu0  ;;  %v1587_v14 = vpop.f32.mrb[15].mxu1 }
 0x18f   : > { %v2580_v20 = vadd.f32 %v2564_v62, %v2541_v2  ;;  %v3348_v21 = vadd.f32 %v3331_v19, %v3227_v18  ;;  %v2496_v13 = vpop.f32.mrb[15].mxu0 }
 0x190   : > { %v2579_v4 = vadd.f32 %v2563_v17, %v2540_v1  ;;  %v3349_v24 = vadd.f32 %v2496_v13, %v1587_v14 }
 0x191   : > { %2596 = vst.msk [vmem:[%s3739_s30 + $0x68] sm:$0xff] %vm455_vm1, %v2580_v20  ;;  %v2543_v26 = vadd.f32 %v3348_v21, %v4180_v49 }
 0x192   : > { %2595 = vst.msk [vmem:[%s3739_s30 + $0x60] sm:$0xff] %vm455_vm1, %v2579_v4  ;;  %v2542_v3 = vadd.f32 %v3349_v24, %v4180_v49 }
 0x193   : > { %v2582_v27 = vadd.f32 %v2566_v23, %v2543_v26 }
 0x194   : > { %v2581_v28 = vadd.f32 %v2565_v25, %v2542_v3 }
 0x195   : > { %2598 = vst.msk [vmem:[%s3739_s30 + $0x78] sm:$0xff] %vm455_vm1, %v2582_v27 }
 0x196   : > { %2597 = vst.msk [vmem:[%s3739_s30 + $0x70] sm:$0xff] %vm455_vm1, %v2581_v28 }
 0x197 PF: > { %s16_s25 = sadd.s32 1, %s3541_s25   ;;  %s4285_s21 = smov %s3533_s23 }
 0x198   : > { %p13_p12 = scmp.ge.s32.totalorder %s16_s25, 6   ;;  %s4286_s22 = smov %s3537_s24 }
 0x199   : > { %s4287_s23 = smov %s4290_s26  ;;  %s4288_s24 = smov %s4294_s27 }
 0x19a   :  { %15 = sbr.rel (!%p13_p12) target bundleno = 3 (0x3), region = 102 }

</bundles_post_ra>
